<compile_context>
chip_gen: v7x
topology: tpu7x:2x2x1
jax: 0.10.0
libtpu: 0.0.40
codegen_flags: <defaults>
</compile_context>

<pallas_src>
import jax
import jax.numpy as jnp
from jax.experimental import pallas as pl
from jax.experimental.pallas import tpu as pltpu


def _make_kernel(c):
    """Build the elementwise kernel body for a static c (matches PyTorch forward)."""
    # NOTE: c == 0 gives inf, same as the PyTorch module's 1/self.c.
    inv_c = 1.0 / float(c)
    if c > 0:
        offset = -inv_c + 1e-06

        def kernel(x_ref, o_ref):
            o_ref[...] = (jnp.maximum(x_ref[...], 0.0) + offset).astype(o_ref.dtype)
    else:
        offset = -inv_c - 1e-06

        def kernel(x_ref, o_ref):
            o_ref[...] = (offset - jnp.maximum(x_ref[...], 0.0)).astype(o_ref.dtype)

    return kernel


def _sublane_multiple(dtype):
    # Native sublane tiling: 8 for 32-bit, 16 for 16-bit, 32 for 8-bit dtypes.
    bits = jnp.dtype(dtype).itemsize * 8
    return max(8, 256 // bits)


def _choose_layout(n, sub):
    """Pick a wide lane dimension that divides n with rows a multiple of `sub`.

    Returns (lanes, pad_elems). pad_elems > 0 only when n doesn't divide cleanly.
    """
    for lanes in (2048, 1024, 512, 256, 128):
        if n % (lanes * sub) == 0:
            return lanes, 0
    chunk = 128 * sub
    pad = (-n) % chunk
    return 128, pad


def constraint_activation(x, c, *, target_block_bytes=2 * 1024 * 1024):
    """Apply ConstraintActivation elementwise via a Pallas TPU kernel.

    x : jnp array of any shape (e.g. NCHW); dtype preserved (f32/bf16/...).
    c : python float (static training parameter, as in the PyTorch module).
    """
    orig_shape = x.shape
    dtype = x.dtype
    itemsize = jnp.dtype(dtype).itemsize
    n = x.size

    sub = _sublane_multiple(dtype)
    lanes, pad = _choose_layout(n, sub)

    x_flat = jnp.ravel(x)
    if pad:
        # Tail fallback: minimal pad to the smallest legal tile. Only fires
        # when n is not already a multiple of (sub * 128).
        x_flat = jnp.pad(x_flat, (0, pad))
    n_pad = n + pad
    rows = n_pad // lanes
    x2d = x_flat.reshape(rows, lanes)

    # ~2 MiB blocks: big enough that per-step pipeline overhead (~0.35 us) is
    # negligible, small enough that 4x (double-buffered in + out) fits every
    # generation's default scoped VMEM (v5e 16 MiB, v6e 32 MiB, v7x 32 MiB).
    rows_per_block = (target_block_bytes // (lanes * itemsize)) // sub * sub
    rows_per_block = max(sub, min(rows_per_block, rows))

    grid = (pl.cdiv(rows, rows_per_block),)

    out2d = pl.pallas_call(
        _make_kernel(c),
        out_shape=jax.ShapeDtypeStruct((rows, lanes), dtype),
        grid=grid,
        in_specs=[pl.BlockSpec((rows_per_block, lanes), lambda i: (i, 0))],
        out_specs=pl.BlockSpec((rows_per_block, lanes), lambda i: (i, 0)),
        compiler_params=pltpu.CompilerParams(
            dimension_semantics=("parallel",)),
    )(x2d)

    if pad:
        return out2d.reshape(-1)[:n].reshape(orig_shape)
    return out2d.reshape(orig_shape)


def constraint_activation_ref(x, c):
    """Pure-JAX reference for correctness checking."""
    if c > 0:
        return jnp.maximum(x, 0.0) - 1.0 / c + 1e-06
    else:
        return -jnp.maximum(x, 0.0) - 1.0 / c - 1e-06


if __name__ == "__main__":
    key = jax.random.PRNGKey(0)
    # NCHW input, small shapes
    x = jax.random.normal(key, (2, 4, 16, 16), dtype=jnp.float32)

    # positive-c branch
    c_pos = 2.0
    out_pos = jax.block_until_ready(constraint_activation(x, c_pos))
    ref_pos = constraint_activation_ref(x, c_pos)
    assert out_pos.shape == x.shape
    assert jnp.allclose(out_pos, ref_pos, atol=1e-6), "positive-c branch mismatch"

    # negative-c branch
    c_neg = -1.5
    out_neg = jax.block_until_ready(constraint_activation(x, c_neg))
    ref_neg = constraint_activation_ref(x, c_neg)
    assert jnp.allclose(out_neg, ref_neg, atol=1e-6), "negative-c branch mismatch"

    # non-tile-multiple size exercises the pad/slice fallback path
    x_odd = jax.random.normal(key, (3, 5, 7, 11), dtype=jnp.float32)
    out_odd = jax.block_until_ready(constraint_activation(x_odd, c_pos))
    ref_odd = constraint_activation_ref(x_odd, c_pos)
    assert jnp.allclose(out_odd, ref_odd, atol=1e-6), "padded-tail path mismatch"

    print("KERNEL_OK")
</pallas_src>

<mosaic_0001>
module attributes {stable_mosaic.version = 11 : i64} {
  func.func @kernel(%arg0: i32, %arg1: memref<8x256xf32, #tpu.memory_space<vmem>>, %arg2: memref<8x256xf32, #tpu.memory_space<vmem>>) attributes {dimension_semantics = [#tpu.dimension_semantics<parallel>], iteration_bounds = array<i64: 1>, scalar_prefetch = 0 : i64, scratch_operands = 0 : i64, tpu.core_type = #tpu.core_type<tc>, window_params = [{transform_indices = @transform_0, window_bounds = array<i64: 8, 256>}, {transform_indices = @transform_1, window_bounds = array<i64: 8, 256>}]} {
    %c0 = arith.constant 0 : index
    %c0_0 = arith.constant 0 : index
    %0 = vector.load %arg1[%c0, %c0_0] : memref<8x256xf32, #tpu.memory_space<vmem>>, vector<8x256xf32>
    %cst = arith.constant 0.000000e+00 : f32
    %1 = vector.broadcast %cst : f32 to vector<8x256xf32>
    %2 = arith.maximumf %0, %1 : vector<8x256xf32>
    %cst_1 = arith.constant -4.999990e-01 : f32
    %3 = vector.broadcast %cst_1 : f32 to vector<8x256xf32>
    %4 = arith.addf %2, %3 : vector<8x256xf32>
    %c0_2 = arith.constant 0 : index
    %c0_3 = arith.constant 0 : index
    %5 = vector.load %arg2[%c0_2, %c0_3] : memref<8x256xf32, #tpu.memory_space<vmem>>, vector<8x256xf32>
    tpu.vector_store %arg2[%c0_2, %c0_3], %4 {strides = array<i32>} : memref<8x256xf32, #tpu.memory_space<vmem>>, vector<8x256xf32>,
    return
  }
  func.func @transform_0(%arg0: i32) -> (i32, i32) {
    %c0_i32 = arith.constant 0 : i32
    %c0_i32_0 = arith.constant 0 : i32
    return %arg0, %c0_i32 : i32, i32
  }
  func.func @transform_1(%arg0: i32) -> (i32, i32) {
    %c0_i32 = arith.constant 0 : i32
    %c0_i32_0 = arith.constant 0 : i32
    return %arg0, %c0_i32 : i32, i32
  }
}

</mosaic_0001>

<bundles_post_ra>
// kernel: tpu_custom_call.1
= control target key start
LH: loop header
LB: loop body
LE: loop exit
PB: predicated region body
PF: predicated region fallthrough
CT: control target
= control target key end

     0   :  { %6 = vsyncpa [#allocation3], 0  ;;  %s130_s0 = inlined_call_operand.hbm [shape: f32[8,256], index: 0, kind: input, shape index: {}]   ;;  %s131_s1 = inlined_call_operand.hbm [shape: f32[8,256], index: 1, kind: output, shape index: {}]  }
   0x1   :  { %7 = vsyncpa [#allocation4], 0  ;;  %s94_s6 = smov [#allocation2]   ;;  %s46_s10 = scalar_lea.hbm %s130_s0, 256 }
   0x2   :  { %s14_s7 = sshll.u32 %s94_s6, 4  ;;  %p47_p0 = scmp.ne.s32.totalorder %s130_s0, %s46_s10  ;;  %s15_s7 = int_to_ptr.vmem [resolvable:$true] %s14_s7 }
   0x3   :  { %p50_p1 = scmp.lt.u32.totalorder %s46_s10, %s130_s0 }
   0x5   :  { %p52_p2 = pnand %p50_p1, %p47_p0 }
   0x7   :  { %55 = shalt.err (!%p52_p2)
}
   0x8   :  { %s56_s15 = scalar_lea.vmem %s15_s7, 256  ;;  %p61_p4 = scmp.lt.s32.totalorder %s15_s7, %s15_s7 }
   0x9   :  { %p57_p3 = scmp.ne.s32.totalorder %s15_s7, %s56_s15  ;;  %p62_p5 = scmp.lt.s32.totalorder %s56_s15, %s56_s15 }
   0xb   :  { %p63_p6 = por %p62_p5, %p61_p4 }
   0xd   :  { %p64_p7 = pnand %p63_p6, %p57_p3 }
   0xf   :  { %67 = shalt.err (!%p64_p7)
}
  0x10   :  { %17 = dma.hbm_to_vmem [thread:$0]  %s130_s0, 256, %s15_s7, [#allocation3]  }
  0x11   :  { %90 = dma.done.wait [#allocation3], 256  }
  0x12   :  { %91 = vsyncadd [#allocation3], 4294967040  ;;  %v21_v0 = vld [vmem:[#allocation2] sm:$0xff]  ;;  %v22_v1 = vld [vmem:[#allocation2 + $0x8] sm:$0xff]  ;;  %s95_s18 = smov [#allocation5]  }
  0x13   :  { %s35_s19 = sshll.u32 %s95_s18, 4  ;;  %v23_v2 = vmax.f32 %v21_v0, 0.0  ;;  %v24_v3 = vmax.f32 %v22_v1, 0.0  ;;  %s36_s19 = int_to_ptr.vmem [resolvable:$true] %s35_s19 }
  0x14   :  { %s68_s20 = scalar_lea.vmem %s36_s19, 256  ;;  %p73_p9 = scmp.lt.s32.totalorder %s36_s19, %s36_s19 }
  0x15   :  { %v25_v4 = vadd.f32 -0.499999, %v23_v2  ;;  %v26_v5 = vadd.f32 -0.499999, %v24_v3  ;;  %p69_p8 = scmp.ne.s32.totalorder %s36_s19, %s68_s20  ;;  %p74_p10 = scmp.lt.s32.totalorder %s68_s20, %s68_s20 }
  0x17   :  { %27 = vst [vmem:[#allocation5] sm:$0xff] %v25_v4  ;;  %28 = vst [vmem:[#allocation5 + $0x8] sm:$0xff] %v26_v5  ;;  %p75_p11 = por %p74_p10, %p73_p9 }
  0x19   :  { %p76_p12 = pnand %p75_p11, %p69_p8 }
  0x1b   :  { %79 = shalt.err (!%p76_p12)
}
  0x1c   :  { %s80_s22 = scalar_lea.hbm %s131_s1, 256 }
  0x1d   :  { %p81_p13 = scmp.ne.s32.totalorder %s131_s1, %s80_s22  ;;  %p84_p0 = scmp.lt.u32.totalorder %s80_s22, %s131_s1 }
  0x1f   :  { %p86_p1 = pnand %p84_p0, %p81_p13 }
  0x21   :  { %89 = shalt.err (!%p86_p1)
}
  0x22   :  { %38 = dma.vmem_to_hbm [thread:$0]  %s36_s19, 256, %s131_s1, [#allocation4]  }
  0x23   :  { %92 = dma.done.wait [#allocation4], 256  }
  0x24   :  { %93 = vsyncadd [#allocation4], 4294967040 }
  0x25   :  { %42 = vsyncpa [#allocation3], 1 }
  0x26   :  { %43 = vsyncpa [#allocation4], 1 }

</bundles_post_ra>
